<compile_context>
chip_gen: v5e
topology: v5e:2x2
jax: 0.10.0
libtpu: 0.0.40
codegen_flags: <defaults>
</compile_context>

<pallas_src>
import functools

import jax
import jax.numpy as jnp
from jax import lax
from jax.experimental import pallas as pl
from jax.experimental.pallas import tpu as pltpu


# ---------------------------------------------------------------------------
# Path A: embedding table resident in VMEM, one grid step per batch row.
# ---------------------------------------------------------------------------
def _resident_kernel(labels_smem, table_ref, out_ref, *, seq_len, num_tokens,
                     inv_seq_len):
    b = pl.program_id(0)
    base = b * seq_len

    def gather_row(s):
        lab = labels_smem[base + s]
        # OOB clamp done on the scalar unit (torch nn.Embedding would raise;
        # there is no in-kernel error path on TPU).
        idx = jnp.maximum(jnp.minimum(lab, num_tokens - 1), 0)
        return table_ref[pl.ds(idx, 1), :].astype(jnp.float32)  # (1, emb_dim)

    if seq_len <= 32:
        # Fully unrolled gather/accumulate; accumulator carried in vregs.
        acc = gather_row(0)
        for s in range(1, seq_len):
            acc = acc + gather_row(s)
    else:
        acc = lax.fori_loop(1, seq_len, lambda s, a: a + gather_row(s),
                            gather_row(0))

    out_ref[...] = jnp.reshape(acc * inv_seq_len,
                               out_ref.shape).astype(out_ref.dtype)
    # TODO(synk): nn.Dropout is identity at inference; training-mode dropout
    # (pltpu.prng_seed + pltpu.stateful_bernoulli mask/scale) not implemented.


def _resident_forward(labels_flat, emb_table, bs, seq_len, vmem_cap):
    num_tokens, emb_dim = emb_table.shape
    out_dtype = emb_table.dtype
    itemsize = jnp.dtype(out_dtype).itemsize
    table_bytes = num_tokens * emb_dim * itemsize

    # Budget for a (possibly double-buffered) table block + output/internals.
    vmem_limit = max(32 << 20,
                     min(int(0.85 * vmem_cap), 2 * table_bytes + (16 << 20)))

    grid_spec = pltpu.PrefetchScalarGridSpec(
        num_scalar_prefetch=1,
        grid=(bs,),
        in_specs=[
            # Whole table, constant block index -> fetched from HBM once per
            # core and kept VMEM-resident across the batch grid.
            pl.BlockSpec((num_tokens, emb_dim), lambda b, labels_ref: (0, 0)),
        ],
        # (bs, 1, emb_dim) view so the block's last two dims equal the full
        # array dims (valid for any emb_dim) and the output stays lane-dense.
        out_specs=pl.BlockSpec((1, 1, emb_dim),
                               lambda b, labels_ref: (b, 0, 0)),
    )

    out3 = pl.pallas_call(
        functools.partial(_resident_kernel, seq_len=seq_len,
                          num_tokens=num_tokens, inv_seq_len=1.0 / seq_len),
        out_shape=jax.ShapeDtypeStruct((bs, 1, emb_dim), out_dtype),
        grid_spec=grid_spec,
        compiler_params=pltpu.CompilerParams(
            dimension_semantics=("parallel",),
            vmem_limit_bytes=vmem_limit),
        cost_estimate=pl.CostEstimate(
            flops=bs * seq_len * emb_dim + bs * emb_dim,
            transcendentals=0,
            bytes_accessed=(table_bytes + labels_flat.size * 4
                            + bs * emb_dim * itemsize)),
    )(labels_flat, emb_table)
    return out3.reshape(bs, emb_dim)


# ---------------------------------------------------------------------------
# Path B: grouped data-dependent BlockSpec gather from HBM (large tables).
# ---------------------------------------------------------------------------
def _gather_kernel(labels_smem, *refs, G, seq_len, inv_seq_len, acc_in_out):
    del labels_smem  # consumed only by the index_maps (scalar prefetch)
    row_refs = refs[:G]
    out_ref = refs[G]
    acc_ref = out_ref if acc_in_out else refs[G + 1]

    c = pl.program_id(1)
    needs_mask = (seq_len % G) != 0  # static

    @pl.when(c == 0)
    def _init():
        acc_ref[...] = jnp.zeros_like(acc_ref)

    total = jnp.zeros(acc_ref.shape, jnp.float32)
    for g in range(G):  # static unroll over the G gathered rows
        row = row_refs[g][...].astype(jnp.float32)
        if needs_mask:
            row = row * (c * G + g < seq_len).astype(jnp.float32)
        total = total + row
    acc_ref[...] += total.astype(acc_ref.dtype)

    @pl.when(c == pl.num_programs(1) - 1)
    def _finalize():
        out_ref[...] = (acc_ref[...].astype(jnp.float32)
                        * inv_seq_len).astype(out_ref.dtype)


def _gather_forward(labels_flat, emb_table, bs, seq_len, group_size):
    num_tokens, emb_dim = emb_table.shape
    out_dtype = emb_table.dtype
    itemsize = jnp.dtype(out_dtype).itemsize
    if group_size is None:
        group_size = 16 if itemsize <= 2 else 8  # fill sublanes / amortize step
    G = max(1, min(group_size, seq_len))
    nc = pl.cdiv(seq_len, G)
    acc_in_out = jnp.dtype(out_dtype) == jnp.dtype(jnp.float32)

    # (V, 1, D) view so each gathered block's last two dims equal full array
    # dims (satisfies the (8,128) block rule for any emb_dim, lane-dense rows).
    emb3 = emb_table.reshape(num_tokens, 1, emb_dim)

    def make_row_map(g):
        def row_map(b, c, labels_ref):
            # Clamp the flat position inside this batch row (tail chunks
            # re-read the last position; masked to zero in-kernel) and clamp
            # the label id (OOB -> nearest valid row; torch would raise).
            pos = b * seq_len + jnp.minimum(c * G + g, seq_len - 1)
            lab = labels_ref[pos]
            idx = jnp.maximum(jnp.minimum(lab, num_tokens - 1), 0)
            return (idx, 0, 0)
        return row_map

    in_specs = [pl.BlockSpec((1, 1, emb_dim), make_row_map(g)) for g in range(G)]
    scratch = [] if acc_in_out else [pltpu.VMEM((1, 1, emb_dim), jnp.float32)]

    out3 = pl.pallas_call(
        functools.partial(_gather_kernel, G=G, seq_len=seq_len,
                          inv_seq_len=1.0 / seq_len, acc_in_out=acc_in_out),
        out_shape=jax.ShapeDtypeStruct((bs, 1, emb_dim), out_dtype),
        grid_spec=pltpu.PrefetchScalarGridSpec(
            num_scalar_prefetch=1,
            grid=(bs, nc),
            in_specs=in_specs,
            out_specs=pl.BlockSpec((1, 1, emb_dim),
                                   lambda b, c, labels_ref: (b, 0, 0)),
            scratch_shapes=scratch),
        compiler_params=pltpu.CompilerParams(
            dimension_semantics=("parallel", "arbitrary")),
        cost_estimate=pl.CostEstimate(
            flops=bs * seq_len * emb_dim + bs * emb_dim,
            transcendentals=0,
            bytes_accessed=(bs * nc * G * emb_dim * itemsize
                            + labels_flat.size * 4
                            + bs * emb_dim * itemsize)),
    )(labels_flat, *([emb3] * G))
    return out3.reshape(bs, emb_dim)


# ---------------------------------------------------------------------------
# Dispatch wrapper (matches LabelEncoder.forward in eval mode).
# ---------------------------------------------------------------------------
def label_encoder_forward(labels, emb_table, *, force_gather=False,
                          group_size=None):
    """labels: [bs, seq_len] int, emb_table: [num_tokens, emb_dim]."""
    bs, seq_len = labels.shape
    num_tokens, emb_dim = emb_table.shape
    itemsize = jnp.dtype(emb_table.dtype).itemsize
    labels_flat = labels.reshape(-1).astype(jnp.int32)

    table_bytes = num_tokens * emb_dim * itemsize
    try:
        vmem_cap = pltpu.get_tpu_info().vmem_capacity_bytes
    except Exception:
        vmem_cap = 64 << 20  # conservative fallback: v7x per-TC VMEM

    # Residency gate derated per generation (v7x 64 MiB vs v5e/v6e 128 MiB);
    # the 2x accounts for a possibly double-buffered table block.
    if (2 * table_bytes <= int(0.7 * vmem_cap)) and not force_gather:
        return _resident_forward(labels_flat, emb_table, bs, seq_len, vmem_cap)
    return _gather_forward(labels_flat, emb_table, bs, seq_len, group_size)


if __name__ == "__main__":
    key = jax.random.PRNGKey(0)
    k1, k2, k3, k4 = jax.random.split(key, 4)

    # Check 1: module-default-ish small shapes (emb_dim=256) -> VMEM-resident path.
    bs, seq_len, num_tokens, emb_dim = 2, 8, 128, 256
    emb_table = jax.random.normal(k1, (num_tokens, emb_dim), dtype=jnp.float32)
    labels = jax.random.randint(k2, (bs, seq_len), 0, num_tokens, dtype=jnp.int32)
    out = jax.block_until_ready(label_encoder_forward(labels, emb_table))
    ref = jnp.take(emb_table, labels, axis=0).mean(axis=1)
    assert out.shape == (bs, emb_dim)
    assert jnp.allclose(out, ref, atol=1e-5, rtol=1e-5)

    # Check 2: force the grouped HBM-gather path (bf16 table -> f32 scratch
    # accumulator; seq_len=10 with G=4 -> multi-chunk accumulation + masked tail).
    bs2, seq_len2, num_tokens2, emb_dim2 = 4, 10, 512, 256
    emb_table2 = jax.random.normal(
        k3, (num_tokens2, emb_dim2), dtype=jnp.float32).astype(jnp.bfloat16)
    labels2 = jax.random.randint(
        k4, (bs2, seq_len2), 0, num_tokens2, dtype=jnp.int32)
    out2 = jax.block_until_ready(
        label_encoder_forward(labels2, emb_table2, force_gather=True,
                              group_size=4))
    ref2 = jnp.take(emb_table2, labels2, axis=0).astype(jnp.float32).mean(axis=1)
    assert out2.shape == (bs2, emb_dim2)
    assert jnp.allclose(out2.astype(jnp.float32), ref2, atol=2e-2, rtol=2e-2)

    print("KERNEL_OK")
</pallas_src>

<mosaic_0001>
module attributes {stable_mosaic.version = 11 : i64} {
  func.func @_resident_kernel(%arg0: i32, %arg1: memref<16xi32, #tpu.memory_space<smem>>, %arg2: memref<128x256xf32, #tpu.memory_space<vmem>>, %arg3: memref<1x1x256xf32, #tpu.memory_space<vmem>>) attributes {dimension_semantics = [#tpu.dimension_semantics<parallel>], iteration_bounds = array<i64: 2>, scalar_prefetch = 1 : i64, scratch_operands = 0 : i64, tpu.core_type = #tpu.core_type<tc>, window_params = [{pipeline_mode = #tpu.pipeline_mode<synchronous>, transform_indices = @transform_0, window_bounds = array<i64: 128, 256>}, {transform_indices = @transform_1, window_bounds = array<i64: 1, 1, 256>}]} {
    %c8_i32 = arith.constant 8 : i32
    %0 = arith.muli %arg0, %c8_i32 : i32
    %c0_i32 = arith.constant 0 : i32
    %1 = arith.addi %0, %c0_i32 : i32
    %2 = arith.index_cast %1 : i32 to index
    %3 = memref.load %arg1[%2] : memref<16xi32, #tpu.memory_space<smem>>
    %c127_i32 = arith.constant 127 : i32
    %4 = arith.minsi %3, %c127_i32 : i32
    %c0_i32_0 = arith.constant 0 : i32
    %5 = arith.maxsi %4, %c0_i32_0 : i32
    %6 = arith.index_cast %5 : i32 to index
    %c0 = arith.constant 0 : index
    %7 = vector.load %arg2[%6, %c0] : memref<128x256xf32, #tpu.memory_space<vmem>>, vector<1x256xf32>
    %c1_i32 = arith.constant 1 : i32
    %8 = arith.addi %0, %c1_i32 : i32
    %9 = arith.index_cast %8 : i32 to index
    %10 = memref.load %arg1[%9] : memref<16xi32, #tpu.memory_space<smem>>
    %c127_i32_1 = arith.constant 127 : i32
    %11 = arith.minsi %10, %c127_i32_1 : i32
    %c0_i32_2 = arith.constant 0 : i32
    %12 = arith.maxsi %11, %c0_i32_2 : i32
    %13 = arith.index_cast %12 : i32 to index
    %c0_3 = arith.constant 0 : index
    %14 = vector.load %arg2[%13, %c0_3] : memref<128x256xf32, #tpu.memory_space<vmem>>, vector<1x256xf32>
    %15 = arith.addf %7, %14 : vector<1x256xf32>
    %c2_i32 = arith.constant 2 : i32
    %16 = arith.addi %0, %c2_i32 : i32
    %17 = arith.index_cast %16 : i32 to index
    %18 = memref.load %arg1[%17] : memref<16xi32, #tpu.memory_space<smem>>
    %c127_i32_4 = arith.constant 127 : i32
    %19 = arith.minsi %18, %c127_i32_4 : i32
    %c0_i32_5 = arith.constant 0 : i32
    %20 = arith.maxsi %19, %c0_i32_5 : i32
    %21 = arith.index_cast %20 : i32 to index
    %c0_6 = arith.constant 0 : index
    %22 = vector.load %arg2[%21, %c0_6] : memref<128x256xf32, #tpu.memory_space<vmem>>, vector<1x256xf32>
    %23 = arith.addf %15, %22 : vector<1x256xf32>
    %c3_i32 = arith.constant 3 : i32
    %24 = arith.addi %0, %c3_i32 : i32
    %25 = arith.index_cast %24 : i32 to index
    %26 = memref.load %arg1[%25] : memref<16xi32, #tpu.memory_space<smem>>
    %c127_i32_7 = arith.constant 127 : i32
    %27 = arith.minsi %26, %c127_i32_7 : i32
    %c0_i32_8 = arith.constant 0 : i32
    %28 = arith.maxsi %27, %c0_i32_8 : i32
    %29 = arith.index_cast %28 : i32 to index
    %c0_9 = arith.constant 0 : index
    %30 = vector.load %arg2[%29, %c0_9] : memref<128x256xf32, #tpu.memory_space<vmem>>, vector<1x256xf32>
    %31 = arith.addf %23, %30 : vector<1x256xf32>
    %c4_i32 = arith.constant 4 : i32
    %32 = arith.addi %0, %c4_i32 : i32
    %33 = arith.index_cast %32 : i32 to index
    %34 = memref.load %arg1[%33] : memref<16xi32, #tpu.memory_space<smem>>
    %c127_i32_10 = arith.constant 127 : i32
    %35 = arith.minsi %34, %c127_i32_10 : i32
    %c0_i32_11 = arith.constant 0 : i32
    %36 = arith.maxsi %35, %c0_i32_11 : i32
    %37 = arith.index_cast %36 : i32 to index
    %c0_12 = arith.constant 0 : index
    %38 = vector.load %arg2[%37, %c0_12] : memref<128x256xf32, #tpu.memory_space<vmem>>, vector<1x256xf32>
    %39 = arith.addf %31, %38 : vector<1x256xf32>
    %c5_i32 = arith.constant 5 : i32
    %40 = arith.addi %0, %c5_i32 : i32
    %41 = arith.index_cast %40 : i32 to index
    %42 = memref.load %arg1[%41] : memref<16xi32, #tpu.memory_space<smem>>
    %c127_i32_13 = arith.constant 127 : i32
    %43 = arith.minsi %42, %c127_i32_13 : i32
    %c0_i32_14 = arith.constant 0 : i32
    %44 = arith.maxsi %43, %c0_i32_14 : i32
    %45 = arith.index_cast %44 : i32 to index
    %c0_15 = arith.constant 0 : index
    %46 = vector.load %arg2[%45, %c0_15] : memref<128x256xf32, #tpu.memory_space<vmem>>, vector<1x256xf32>
    %47 = arith.addf %39, %46 : vector<1x256xf32>
    %c6_i32 = arith.constant 6 : i32
    %48 = arith.addi %0, %c6_i32 : i32
    %49 = arith.index_cast %48 : i32 to index
    %50 = memref.load %arg1[%49] : memref<16xi32, #tpu.memory_space<smem>>
    %c127_i32_16 = arith.constant 127 : i32
    %51 = arith.minsi %50, %c127_i32_16 : i32
    %c0_i32_17 = arith.constant 0 : i32
    %52 = arith.maxsi %51, %c0_i32_17 : i32
    %53 = arith.index_cast %52 : i32 to index
    %c0_18 = arith.constant 0 : index
    %54 = vector.load %arg2[%53, %c0_18] : memref<128x256xf32, #tpu.memory_space<vmem>>, vector<1x256xf32>
    %55 = arith.addf %47, %54 : vector<1x256xf32>
    %c7_i32 = arith.constant 7 : i32
    %56 = arith.addi %0, %c7_i32 : i32
    %57 = arith.index_cast %56 : i32 to index
    %58 = memref.load %arg1[%57] : memref<16xi32, #tpu.memory_space<smem>>
    %c127_i32_19 = arith.constant 127 : i32
    %59 = arith.minsi %58, %c127_i32_19 : i32
    %c0_i32_20 = arith.constant 0 : i32
    %60 = arith.maxsi %59, %c0_i32_20 : i32
    %61 = arith.index_cast %60 : i32 to index
    %c0_21 = arith.constant 0 : index
    %62 = vector.load %arg2[%61, %c0_21] : memref<128x256xf32, #tpu.memory_space<vmem>>, vector<1x256xf32>
    %63 = arith.addf %55, %62 : vector<1x256xf32>
    %cst = arith.constant 1.250000e-01 : f32
    %64 = vector.broadcast %cst : f32 to vector<1x256xf32>
    %65 = arith.mulf %63, %64 : vector<1x256xf32>
    %66 = vector.shape_cast %65 : vector<1x256xf32> to vector<1x1x256xf32>
    %c0_22 = arith.constant 0 : index
    %c0_23 = arith.constant 0 : index
    %c0_24 = arith.constant 0 : index
    %67 = vector.load %arg3[%c0_22, %c0_23, %c0_24] : memref<1x1x256xf32, #tpu.memory_space<vmem>>, vector<1x1x256xf32>
    tpu.vector_store %arg3[%c0_22, %c0_23, %c0_24], %66 {strides = array<i32>} : memref<1x1x256xf32, #tpu.memory_space<vmem>>, vector<1x1x256xf32>,
    return
  }
  func.func @transform_0(%arg0: i32, %arg1: memref<16xi32, #tpu.memory_space<smem>>) -> (i32, i32) {
    %c0_i32 = arith.constant 0 : i32
    %c0_i32_0 = arith.constant 0 : i32
    %c0_i32_1 = arith.constant 0 : i32
    return %c0_i32, %c0_i32_0 : i32, i32
  }
  func.func @transform_1(%arg0: i32, %arg1: memref<16xi32, #tpu.memory_space<smem>>) -> (i32, i32, i32) {
    %c0_i32 = arith.constant 0 : i32
    %c0_i32_0 = arith.constant 0 : i32
    %c0_i32_1 = arith.constant 0 : i32
    return %arg0, %c0_i32, %c0_i32_0 : i32, i32, i32
  }
}

</mosaic_0001>

<bundles_post_ra>
// kernel: tpu_custom_call.1
= control target key start
LH: loop header
LB: loop body
LE: loop exit
PB: predicated region body
PF: predicated region fallthrough
CT: control target
= control target key end

     0   :  { %s609_s12 = smov [#allocation3]   ;;  %s776_s0 = inlined_call_operand.hbm [shape: s32[16], index: 0, kind: input, shape index: {}]   ;;  %s777_s1 = inlined_call_operand.hbm [shape: f32[128,256], index: 1, kind: input, shape index: {}]   ;;  %s778_s2 = inlined_call_operand.hbm [shape: f32[2,1,256], index: 2, kind: output, shape index: {}]  }
   0x1   :  { %s8_s11 = sshll.u32 %s776_s0, 4  ;;  %s9_s11 = int_to_ptr.hbm [resolvable:$true] %s8_s11 }
   0x2   :  { %11 = dma.hbm_to_smem %s9_s11, 16, %s609_s12, [#allocation2] }
   0x3   :  { %583 = dma.done.wait [#allocation2], 16 }
   0x4   :  { %584 = vsyncadd [#allocation2], 4294967280 }
   0x5   :  { %14 = sfence }
   0x6   :  { %15 = vsyncpa [#allocation5], 0 }
   0x7   :  { %16 = vsyncpa [#allocation6], 0 }
   0x8   :  { %18 = vsyncpa [#allocation6 + $0x1], 0  ;;  %s631_s13 = smov 0   ;;  %s633_s14 = smov 0  }
   0x9   :  { %s635_s15 = smov 0   ;;  %s637_s16 = smov 0  }
   0xa LB: > { %s652_s0 = sadd.s32 4294967295, %s607_s16   ;;  %s353_s17 = sadd.s32 4294967294, %s607_s16   ;;  %s607_s16 = sphi %s637_s16, %s784_s16   ;;  %s603_s15 = sphi %s635_s15, %s783_s15   ;;  %s599_s14 = sphi %s633_s14, %s782_s14   ;;  %s595_s13 = sphi %s631_s13, %s781_s13  }
   0xb   : > { %s656_s18 = sadd.s32 1, %s607_s16   ;;  %s52_s19 = sadd.s32 1, %s603_s15 }
   0xc   : > { %s49_s20 = ssub.s32 %s607_s16, %s656_s18  ;;  %p62_p0 = scmp.ne.s32.totalorder %s603_s15, %s599_s14 }
   0xd   : > { %p50_p1 = scmp.eq.s32.totalorder %s49_s20, 0  ;;  %p63_p2 = scmp.eq.s32.totalorder %s652_s0, 1 }
   0xe   : > { %p68_p3 = scmp.ne.s32.totalorder %s599_s14, %s595_s13  ;;  %p69_p4 = scmp.eq.s32.totalorder %s353_s17, 1 }
   0xf   : > { %s667_s21 = scalar_select %p50_p1, %s603_s15, %s52_s19  }
  0x10   : > { %p669_p5 = por %p63_p2, %p62_p0  ;;  %p673_p6 = por %p69_p4, %p68_p3 }
  0x11   : > { %p354_p7 = scmp.ge.s32.totalorder %s607_s16, 1  ;;  %p76_p8 = scmp.lt.s32.totalorder %s607_s16, 3 }
  0x12   : > { %p458_p9 = scmp.eq.s32.totalorder %s652_s0, 0  ;;  %s87_s26 = sshll.u32 %s777_s1, 4  ;;  %s88_s26 = int_to_ptr.hbm [resolvable:$true] %s87_s26 }
  0x13   : > { %p77_p10 = pnand %p354_p7, %p76_p8  ;;  %s610_s27 = smov [#allocation4]  }
  0x14   : > { %s89_s28 = sshll.u32 %s610_s27, 4  ;;  %s611_s29 = smov 256   ;;  %s90_s28 = int_to_ptr.vmem [resolvable:$true] %s89_s28 }
  0x15   : > { %p450_p11 = pneg %p77_p10  ;;  %s612_s30 = smov 16  }
  0x16   : > { %105 = sbr.rel (%p77_p10) target bundleno = 90 (0x5a), region = 24 }
  0x17   : > { %p451_p12 = pnand %p458_p9, %p450_p11 }
  0x19   : > { %453 = dma.hbm_to_vmem [thread:$0]  (!%p451_p12), %s88_s26, 4096, %s90_s28, [#allocation5], %s611_s29, %s611_s29, %s612_s30  }
  0x1b   : > { %586 = dma.done.wait (%p458_p9), [#allocation5], 4096  }
  0x1c   : > { %588 = vsyncadd (%p458_p9), [#allocation5], 4294963200  ;;  %s690_s3 = sshll.u32 %s652_s0, 3  ;;  %v249_v13 = vlaneseq }
  0x1d   : > { %s122_s4 = sld [smem:[#allocation3 + %s690_s3]]  ;;  %s136_s5 = sadd.s32 1, %s690_s3 }
  0x1e   : > { %s137_s6 = sld [smem:[#allocation3 + %s136_s5]]  ;;  %s152_s7 = sadd.s32 2, %s690_s3  ;;  %vm251_vm0 = vcmp.lt.s32.totalorder %v249_v13, 256 }
  0x1f   : > { %s695_s8 = sld [smem:[#allocation3 + %s152_s7]]  ;;  %s168_s9 = sadd.s32 3, %s690_s3 }
  0x20   : > { %s698_s10 = sld [smem:[#allocation3 + %s168_s9]]  ;;  %s184_s11 = sadd.s32 4, %s690_s3 }
  0x21   : > { %s701_s12 = sld [smem:[#allocation3 + %s184_s11]]  ;;  %s200_s17 = sadd.s32 5, %s690_s3 }
  0x22   : > { %s704_s19 = sld [smem:[#allocation3 + %s200_s17]]  ;;  %s216_s27 = sadd.s32 6, %s690_s3 }
  0x23   : > { %p123_p13 = scmp.lt.s32.totalorder %s122_s4, 127  ;;  %p360_p0 = scmp.gt.s32.totalorder %s122_s4, 0 }
  0x24   : > { %p138_p1 = scmp.lt.s32.totalorder %s137_s6, 127  ;;  %p367_p2 = scmp.gt.s32.totalorder %s137_s6, 0 }
  0x25   : > { %s786_s4 = smov (!%p123_p13, %s122_s4), 127  ;;  %p154_p3 = scmp.lt.s32.totalorder %s695_s8, 127 }
  0x26   : > { %s788_s4 = smov (!%p360_p0, %s786_s4), 0  ;;  %s790_s6 = smov (!%p138_p1, %s137_s6), 127 }
  0x27   : > { %s127_s20 = sshra.s32 %s788_s4, 3  ;;  %s130_s24 = sand.u32 7, %s788_s4 }
  0x28   : > { %s422_s25 = sshll.u32 %s127_s20, 4  ;;  %p374_p4 = scmp.gt.s32.totalorder %s695_s8, 0 }
  0x29   : > { %s133_s26 = sadd.s32 %s422_s25, %s130_s24  ;;  %s792_s6 = smov (!%p367_p2, %s790_s6), 0 }
  0x2a   : > { %s794_s8 = smov (!%p154_p3, %s695_s8), 127  ;;  %s142_s28 = sshra.s32 %s792_s6, 3 }
  0x2b   : > { %s145_s29 = sand.u32 7, %s792_s6  ;;  %s425_s30 = sshll.u32 %s142_s28, 4 }
  0x2c   : > { %p170_p7 = scmp.lt.s32.totalorder %s698_s10, 127  ;;  %s148_s5 = sadd.s32 %s425_s30, %s145_s29 }
  0x2d   : > { %p381_p8 = scmp.gt.s32.totalorder %s698_s10, 0  ;;  %p186_p9 = scmp.lt.s32.totalorder %s701_s12, 127 }
  0x2e   : > { %s796_s8 = smov (!%p374_p4, %s794_s8), 0  ;;  %s798_s10 = smov (!%p170_p7, %s698_s10), 127 }
  0x2f   : > { %s158_s4 = sshra.s32 %s796_s8, 3  ;;  %s161_s7 = sand.u32 7, %s796_s8 }
  0x30   : > { %s428_s9 = sshll.u32 %s158_s4, 4  ;;  %p388_p10 = scmp.gt.s32.totalorder %s701_s12, 0 }
  0x31   : > { %s164_s11 = sadd.s32 %s428_s9, %s161_s7  ;;  %p202_p11 = scmp.lt.s32.totalorder %s704_s19, 127 }
  0x32   : > { %p395_p12 = scmp.gt.s32.totalorder %s704_s19, 0  ;;  %s717_s6 = sld [smem:[#allocation3 + %s216_s27]] }
  0x33   : > { %s800_s10 = smov (!%p381_p8, %s798_s10), 0  ;;  %s134_s25 = scalar_lea.vmem [#allocation4], %s133_s26 }
  0x34   : > { %s187_s17 = scalar_select %p186_p9, %s701_s12, 127  ;;  %v135_v0 = vld [vmem:[%s134_s25] ss:$8 sm:$0x3] }
  0x35   : > { %s174_s20 = sshra.s32 %s800_s10, 3  ;;  %s177_s24 = sand.u32 7, %s800_s10 }
  0x36   : > { %s431_s28 = sshll.u32 %s174_s20, 4  ;;  %s232_s29 = sadd.s32 7, %s690_s3 }
  0x37   : > { %s149_s8 = scalar_lea.vmem [#allocation4], %s148_s5  ;;  %s180_s30 = sadd.s32 %s431_s28, %s177_s24 }
  0x38   : > { %v150_v1 = vld [vmem:[%s149_s8] ss:$8 sm:$0x3]  ;;  %s721_s4 = sld [smem:[#allocation3 + %s232_s29]]  ;;  %s802_s17 = smov (!%p388_p10, %s187_s17), 0 }
  0x39   : > { %v151_v2 = vadd.f32 %v150_v1, %v135_v0  ;;  %s203_s27 = scalar_select %p202_p11, %s704_s19, 127 }
  0x3a   : > { %s165_s7 = scalar_lea.vmem [#allocation4], %s164_s11  ;;  %s190_s10 = sshra.s32 %s802_s17, 3 }
  0x3b   : > { %v166_v3 = vld [vmem:[%s165_s7] ss:$8 sm:$0x3]  ;;  %s193_s26 = sand.u32 7, %s802_s17  ;;  %s434_s3 = sshll.u32 %s190_s10, 4 }
  0x3c   : > { %p218_p13 = scmp.lt.s32.totalorder %s717_s6, 127  ;;  %s196_s5 = sadd.s32 %s434_s3, %s193_s26  ;;  %v167_v4 = vadd.f32 %v166_v3, %v151_v2 }
  0x3d   : > { %p402_p0 = scmp.gt.s32.totalorder %s717_s6, 0  ;;  %s181_s9 = scalar_lea.vmem [#allocation4], %s180_s30 }
  0x3e   : > { %v182_v5 = vld [vmem:[%s181_s9] ss:$8 sm:$0x3]  ;;  %s804_s27 = smov (!%p395_p12, %s203_s27), 0  ;;  %p234_p1 = scmp.lt.s32.totalorder %s721_s4, 127 }
  0x3f   : > { %s219_s12 = scalar_select %p218_p13, %s717_s6, 127  ;;  %v183_v6 = vadd.f32 %v182_v5, %v167_v4 }
  0x40   : > { %s206_s20 = sshra.s32 %s804_s27, 3  ;;  %s209_s11 = sand.u32 7, %s804_s27 }
  0x41   : > { %s437_s24 = sshll.u32 %s206_s20, 4  ;;  %s118_s17 = sand.u32 1, %s599_s14  }
  0x42   : > { %s197_s25 = scalar_lea.vmem [#allocation4], %s196_s5  ;;  %s212_s28 = sadd.s32 %s437_s24, %s209_s11 }
  0x43   : > { %v198_v7 = vld [vmem:[%s197_s25] ss:$8 sm:$0x3]  ;;  %p409_p2 = scmp.gt.s32.totalorder %s721_s4, 0  ;;  %s806_s12 = smov (!%p402_p0, %s219_s12), 0 }
  0x44   : > { %v199_v8 = vadd.f32 %v198_v7, %v183_v6  ;;  %s235_s29 = scalar_select %p234_p1, %s721_s4, 127 }
  0x45   : > { %s213_s19 = scalar_lea.vmem [#allocation4], %s212_s28  ;;  %s222_s8 = sshra.s32 %s806_s12, 3 }
  0x46   : > { %v214_v9 = vld [vmem:[%s213_s19] ss:$8 sm:$0x3]  ;;  %s225_s30 = sand.u32 7, %s806_s12  ;;  %s440_s27 = sshll.u32 %s222_s8, 4 }
  0x47   : > { %s358_s7 = sshll.u32 %s118_s17, 1  ;;  %s228_s10 = sadd.s32 %s440_s27, %s225_s30  ;;  %v215_v10 = vadd.f32 %v214_v9, %v199_v8 }
  0x48   : > { %s417_s26 = sshll.u32 %s652_s0, 1  ;;  %s229_s3 = scalar_lea.vmem [#allocation4], %s228_s10 }
  0x49   : > { %v230_v11 = vld [vmem:[%s229_s3] ss:$8 sm:$0x3]  ;;  %s808_s29 = smov (!%p409_p2, %s235_s29), 0  ;;  %s265_s24 = scalar_lea.hbm %s778_s2, %s417_s26 }
  0x4a   : > { %s238_s5 = sshra.s32 %s808_s29, 3  ;;  %s241_s9 = sand.u32 7, %s808_s29  ;;  %v231_v12 = vadd.f32 %v230_v11, %v215_v10 }
  0x4b   : > { %s443_s6 = sshll.u32 %s238_s5, 4  ;;  %s120_s25 = scalar_lea.vmem [#allocation7], %s358_s7 }
  0x4c   : > { %s244_s12 = sadd.s32 %s443_s6, %s241_s9  ;;  %s267_s28 = sshll.u32 %s120_s25, 4  ;;  %s268_s28 = int_to_ptr.vmem [resolvable:$true] %s267_s28 }
  0x4d   : > { %s245_s19 = scalar_lea.vmem [#allocation4], %s244_s12  ;;  %s269_s0 = sshll.u32 %s265_s24, 4  ;;  %s270_s0 = int_to_ptr.hbm [resolvable:$true] %s269_s0 }
  0x4e   : > { %v246_v14 = vld [vmem:[%s245_s19] ss:$8 sm:$0x3]  ;;  %s255_s4 = scalar_lea.sflag [#allocation6], %s118_s17  ;;  %s553_s29 = sshra.s32 %s270_s0, 4  ;;  %s554_s29 = int_to_ptr.hbm [resolvable:$true] %s553_s29 }
  0x4f   : > { %v247_v15 = vadd.f32 %v246_v14, %v231_v12  ;;  %s555_s8 = scalar_lea.hbm %s554_s29, 2  ;;  %s559_s7 = scalar_lea.hbm %s778_s2, 4 }
  0x50   : > { %p556_p3 = scmp.ne.s32.totalorder %s554_s29, %s555_s8  ;;  %p560_p8 = scmp.lt.s32.totalorder %s554_s29, %s778_s2 }
  0x51   : > { %v248_v16 = vmul.f32 0.125, %v247_v15  ;;  %p561_p9 = scmp.lt.s32.totalorder %s559_s7, %s555_s8 }
  0x52   : > { %p557_p4 = pnand %p556_p3, %p669_p5 }
  0x53   : > { %253 = vst.msk [vmem:[%s120_s25] sm:$0x3] %vm251_vm0, %v248_v16  ;;  %p562_p10 = por %p561_p9, %p560_p8 }
  0x54   : > { %p558_p7 = pneg %p557_p4 }
  0x56   : > { %p563_p11 = pnand %p562_p10, %p558_p7 }
  0x58   : > { %566 = shalt.err (!%p563_p11)
}
  0x59   : > { %448 = dma.vmem_to_hbm [thread:$0]  (%p669_p5), %s268_s28, 32, %s270_s0, %s255_s4  }
  0x5a PF: > { %p460_p12 = scmp.ge.s32.totalorder %s607_s16, 2  ;;  %s281_s17 = sand.u32 1, %s595_s13  }
  0x5b   : > { %s282_s3 = scalar_lea.sflag [#allocation6], %s281_s17 }
  0x5c   : > { %p455_p13 = pnand %p460_p12, %p673_p6 }
  0x5e   : > { %p456_p0 = pneg %p455_p13 }
  0x60   : > { %590 = dma.done.wait (%p456_p0), %s282_s3, 32  }
  0x61   : > { %592 = vsyncadd (%p456_p0), %s282_s3, 4294967264  ;;  %p21_p1 = scmp.ge.s32.totalorder %s656_s18, 4   ;;  %s781_s13 = smov %s599_s14 }
  0x62   : > { %s782_s14 = smov %s603_s15  ;;  %s783_s15 = smov %s667_s21 }
  0x63   : > { %s784_s16 = smov %s656_s18  ;;  %23 = sbr.rel (!%p21_p1) target bundleno = 10 (0xa), region = 69 }
  0x68   :  { %288 = vsyncpa [#allocation5], 1 }
  0x69   :  { %290 = vsyncpa [#allocation5 + $0x1], 1 }
  0x6a   :  { %291 = vsyncpa [#allocation6], 1 }
  0x6b   :  { %293 = vsyncpa [#allocation6 + $0x1], 1 }

</bundles_post_ra>
